<compile_context>
chip_gen: v7x
topology: tpu7x:2x2x1
jax: 0.10.0
libtpu: 0.0.40
codegen_flags: <defaults>
</compile_context>

<pallas_src>
import functools
import math

import jax
import jax.numpy as jnp
from jax import lax
from jax.experimental import pallas as pl
from jax.experimental.pallas import tpu as pltpu


def _round_up(x, m):
    return ((x + m - 1) // m) * m


def _pick_tk(lk, cap=1024):
    """Key tile: keep tail padding < 128 keys while amortizing per-step overhead."""
    lk128 = _round_up(lk, 128)
    if lk128 <= cap:
        return lk128                      # single k block, pad < 128
    for tk in (1024, 512, 256, 128):
        if tk <= cap and lk128 % tk == 0:  # tail pad stays < 128
            return tk
    return 128                             # unreachable (lk128 % 128 == 0)


def _sdpa_flash_kernel(q_ref, k_ref, v_ref, o_ref, qs_ref, m_ref, l_ref, acc_ref,
                       *, scale, valid_last, mask_last, single_k_block):
    kb = pl.program_id(2)

    @pl.when(kb == 0)
    def _init():
        # The q block is resident across the whole k loop -> scale it once, in f32.
        qs_ref[...] = (q_ref[0].astype(jnp.float32) * scale).astype(qs_ref.dtype)
        m_ref[...] = jnp.full_like(m_ref, -jnp.inf)
        l_ref[...] = jnp.zeros_like(l_ref)
        acc_ref[...] = jnp.zeros_like(acc_ref)

    q = qs_ref[...]                 # [TQ, D]   pre-scaled
    k = k_ref[0]                    # [TK, D]
    v = v_ref[0]                    # [TK, Dv]

    # q @ k^T via dimension_numbers (contract D against D, no materialized transpose).
    s = lax.dot_general(q, k, (((1,), (1,)), ((), ())),
                        preferred_element_type=jnp.float32)        # [TQ, TK] f32

    if mask_last:
        # Invariant: padding < 128 <= tk, so the (only) masked block always holds
        # at least one real key -> the -inf init / -1e30 mask stay well-behaved.
        def _mask(x):
            col = lax.broadcasted_iota(jnp.int32, x.shape, 1)
            return jnp.where(col < valid_last, x, jnp.float32(-1e30))

        if single_k_block:
            s = _mask(s)
        else:
            s = lax.cond(kb == pl.num_programs(2) - 1, _mask, lambda x: x, s)

    # Online softmax update.
    m_prev = m_ref[...]
    m_new = jnp.maximum(m_prev, jnp.max(s, axis=-1, keepdims=True))
    alpha = jnp.exp(m_prev - m_new)
    p = jnp.exp(s - m_new)                                          # [TQ, TK] f32

    l_ref[...] = alpha * l_ref[...] + jnp.sum(p, axis=-1, keepdims=True)
    acc_ref[...] = alpha * acc_ref[...] + jnp.dot(
        p.astype(v.dtype), v, preferred_element_type=jnp.float32)
    m_ref[...] = m_new

    @pl.when(kb == pl.num_programs(2) - 1)
    def _finalize():
        inv_l = pl.reciprocal(l_ref[...], approx=True)              # EUP slot
        o_ref[0] = (acc_ref[...] * inv_l).astype(o_ref.dtype)


def scaled_dot_product_attention(q, k, v, temperature):
    """softmax(q @ k^T / temperature, axis=-1) @ v, batch-first (torch.bmm layout)."""
    B, Lq, D = q.shape
    Bk, Lk, Dk = k.shape
    Bv, Lkv, Dv = v.shape
    assert B == Bk == Bv and D == Dk and Lk == Lkv

    # Query tile ("parallel"): as large as practical; keep >= 2 q blocks when B == 1
    # so both v7x TensorCores get work.
    tq_cap = 512
    if B == 1 and Lq > 8:
        tq_cap = min(tq_cap, _round_up((Lq + 1) // 2, 8))
    tq = min(tq_cap, _round_up(Lq, 8))
    lq_p = _round_up(Lq, tq)

    # Key tile ("arbitrary" reduction axis): tail padding kept < 128 keys.
    tk = _pick_tk(Lk)
    lk_p = _round_up(Lk, tk)

    # Only sequence dims are ever padded; feature dims pass through untouched.
    if lq_p != Lq:
        q = jnp.pad(q, ((0, 0), (0, lq_p - Lq), (0, 0)))
    if lk_p != Lk:
        k = jnp.pad(k, ((0, 0), (0, lk_p - Lk), (0, 0)))
        v = jnp.pad(v, ((0, 0), (0, lk_p - Lk), (0, 0)))

    n_q = lq_p // tq
    n_k = lk_p // tk

    kernel = functools.partial(
        _sdpa_flash_kernel,
        scale=1.0 / float(temperature),
        valid_last=Lk - (n_k - 1) * tk,     # real keys in the last k block
        mask_last=(lk_p != Lk),
        single_k_block=(n_k == 1),
    )

    # Rough per-step VMEM footprint -> explicit scoped-VMEM limit (>= 32 MiB raises
    # the v5e default; capped at 64 MiB so a v7x tiling never over-asks).
    itemsize = q.dtype.itemsize
    est = (2 * (tq * D + tk * D + tk * Dv + tq * Dv) * itemsize   # double-buffered I/O
           + (tq * D + tq * Dv + 2 * tq) * 4                      # qs/acc/m/l scratch
           + 3 * tq * tk * 4)                                     # s/p temporaries
    vmem_limit = int(min(64 * 2**20, max(32 * 2**20, 2 * est)))

    out = pl.pallas_call(
        kernel,
        out_shape=jax.ShapeDtypeStruct((B, lq_p, Dv), q.dtype),
        grid_spec=pltpu.PrefetchScalarGridSpec(
            num_scalar_prefetch=0,
            grid=(B, n_q, n_k),
            in_specs=[
                pl.BlockSpec((1, tq, D), lambda b, qi, ki: (b, qi, 0)),
                pl.BlockSpec((1, tk, D), lambda b, qi, ki: (b, ki, 0)),
                pl.BlockSpec((1, tk, Dv), lambda b, qi, ki: (b, ki, 0)),
            ],
            out_specs=pl.BlockSpec((1, tq, Dv), lambda b, qi, ki: (b, qi, 0)),
            scratch_shapes=[
                pltpu.VMEM((tq, D), q.dtype),          # pre-scaled q (per q tile)
                pltpu.VMEM((tq, 1), jnp.float32),      # running max m
                pltpu.VMEM((tq, 1), jnp.float32),      # running denom l
                pltpu.VMEM((tq, Dv), jnp.float32),     # f32 output accumulator
            ],
        ),
        compiler_params=pltpu.CompilerParams(
            dimension_semantics=("parallel", "parallel", "arbitrary"),
            vmem_limit_bytes=vmem_limit,
        ),
    )(q, k, v)

    if lq_p != Lq:
        out = out[:, :Lq, :]
    return out


def _reference(q, k, v, temperature):
    s = jnp.einsum("bqd,bkd->bqk", q.astype(jnp.float32),
                   k.astype(jnp.float32)) / temperature
    p = jax.nn.softmax(s, axis=2)
    return jnp.einsum("bqk,bkd->bqd", p, v.astype(jnp.float32)).astype(q.dtype)


if __name__ == "__main__":
    key = jax.random.PRNGKey(0)

    def run_case(B, Lq, Lk, D, Dv, key):
        temperature = math.sqrt(D)   # standard d_k ** 0.5 temperature
        kq, kk, kv, key = jax.random.split(key, 4)
        q = jax.random.normal(kq, (B, Lq, D), dtype=jnp.float32)
        k = jax.random.normal(kk, (B, Lk, D), dtype=jnp.float32)
        v = jax.random.normal(kv, (B, Lk, Dv), dtype=jnp.float32)
        out = jax.block_until_ready(scaled_dot_product_attention(q, k, v, temperature))
        ref = _reference(q, k, v, temperature)
        assert out.shape == (B, Lq, Dv)
        assert jnp.allclose(out, ref, atol=2e-3, rtol=2e-3), "mismatch vs reference"
        return key

    # Tiny shape matching the module's typical per-head use (single, heavily padded k block).
    key = run_case(B=2, Lq=8, Lk=8, D=32, Dv=32, key=key)
    # Non-128 feature dims, single large k block with last-block masking.
    key = run_case(B=2, Lq=512, Lk=700, D=64, Dv=80, key=key)
    # Multi-block online-softmax reduction (n_k > 1) with masking only on the final block.
    key = run_case(B=2, Lq=200, Lk=1300, D=64, Dv=64, key=key)

    print("KERNEL_OK")
</pallas_src>

<mosaic_0001>
module attributes {stable_mosaic.version = 11 : i64} {
  func.func @_sdpa_flash_kernel(%arg0: i32, %arg1: i32, %arg2: i32, %arg3: memref<1x8x32xf32, #tpu.memory_space<vmem>>, %arg4: memref<1x128x32xf32, #tpu.memory_space<vmem>>, %arg5: memref<1x128x32xf32, #tpu.memory_space<vmem>>, %arg6: memref<1x8x32xf32, #tpu.memory_space<vmem>>, %arg7: memref<8x32xf32, #tpu.memory_space<vmem>>, %arg8: memref<8x1xf32, #tpu.memory_space<vmem>>, %arg9: memref<8x1xf32, #tpu.memory_space<vmem>>, %arg10: memref<8x32xf32, #tpu.memory_space<vmem>>) attributes {dimension_semantics = [#tpu.dimension_semantics<parallel>, #tpu.dimension_semantics<parallel>, #tpu.dimension_semantics<arbitrary>], iteration_bounds = array<i64: 2, 1, 1>, scalar_prefetch = 0 : i64, scratch_operands = 4 : i64, tpu.core_type = #tpu.core_type<tc>, window_params = [{transform_indices = @transform_0, window_bounds = array<i64: 1, 8, 32>}, {transform_indices = @transform_1, window_bounds = array<i64: 1, 128, 32>}, {transform_indices = @transform_2, window_bounds = array<i64: 1, 128, 32>}, {transform_indices = @transform_3, window_bounds = array<i64: 1, 8, 32>}]} {
    %c0_i32 = arith.constant 0 : i32
    %0 = arith.cmpi eq, %arg2, %c0_i32 : i32
    %1 = arith.extui %0 : i1 to i32
    %c0_i32_0 = arith.constant 0 : i32
    %2 = arith.cmpi ne, %1, %c0_i32_0 : i32
    scf.if %2 {
      %c0_26 = arith.constant 0 : index
      %c0_27 = arith.constant 0 : index
      %c0_28 = arith.constant 0 : index
      %39 = vector.load %arg3[%c0_26, %c0_27, %c0_28] : memref<1x8x32xf32, #tpu.memory_space<vmem>>, vector<1x8x32xf32>
      %40 = vector.shape_cast %39 : vector<1x8x32xf32> to vector<8x32xf32>
      %cst_29 = arith.constant 0.176776692 : f32
      %41 = vector.broadcast %cst_29 : f32 to vector<8x32xf32>
      %42 = arith.mulf %40, %41 : vector<8x32xf32>
      %c0_30 = arith.constant 0 : index
      %c0_31 = arith.constant 0 : index
      %43 = vector.load %arg7[%c0_30, %c0_31] : memref<8x32xf32, #tpu.memory_space<vmem>>, vector<8x32xf32>
      tpu.vector_store %arg7[%c0_30, %c0_31], %42 {strides = array<i32>} : memref<8x32xf32, #tpu.memory_space<vmem>>, vector<8x32xf32>,
      %cst_32 = arith.constant 0xFF800000 : f32
      %44 = vector.broadcast %cst_32 : f32 to vector<8x1xf32>
      %c0_33 = arith.constant 0 : index
      %c0_34 = arith.constant 0 : index
      %45 = vector.load %arg8[%c0_33, %c0_34] : memref<8x1xf32, #tpu.memory_space<vmem>>, vector<8x1xf32>
      tpu.vector_store %arg8[%c0_33, %c0_34], %44 {strides = array<i32>} : memref<8x1xf32, #tpu.memory_space<vmem>>, vector<8x1xf32>,
      %cst_35 = arith.constant 0.000000e+00 : f32
      %46 = vector.broadcast %cst_35 : f32 to vector<8x1xf32>
      %c0_36 = arith.constant 0 : index
      %c0_37 = arith.constant 0 : index
      %47 = vector.load %arg9[%c0_36, %c0_37] : memref<8x1xf32, #tpu.memory_space<vmem>>, vector<8x1xf32>
      tpu.vector_store %arg9[%c0_36, %c0_37], %46 {strides = array<i32>} : memref<8x1xf32, #tpu.memory_space<vmem>>, vector<8x1xf32>,
      %cst_38 = arith.constant 0.000000e+00 : f32
      %48 = vector.broadcast %cst_38 : f32 to vector<8x32xf32>
      %c0_39 = arith.constant 0 : index
      %c0_40 = arith.constant 0 : index
      %49 = vector.load %arg10[%c0_39, %c0_40] : memref<8x32xf32, #tpu.memory_space<vmem>>, vector<8x32xf32>
      tpu.vector_store %arg10[%c0_39, %c0_40], %48 {strides = array<i32>} : memref<8x32xf32, #tpu.memory_space<vmem>>, vector<8x32xf32>,
    } else {
    }
    %c0 = arith.constant 0 : index
    %c0_1 = arith.constant 0 : index
    %3 = vector.load %arg7[%c0, %c0_1] : memref<8x32xf32, #tpu.memory_space<vmem>>, vector<8x32xf32>
    %c0_2 = arith.constant 0 : index
    %c0_3 = arith.constant 0 : index
    %c0_4 = arith.constant 0 : index
    %4 = vector.load %arg4[%c0_2, %c0_3, %c0_4] : memref<1x128x32xf32, #tpu.memory_space<vmem>>, vector<1x128x32xf32>
    %5 = vector.shape_cast %4 : vector<1x128x32xf32> to vector<128x32xf32>
    %c0_5 = arith.constant 0 : index
    %c0_6 = arith.constant 0 : index
    %c0_7 = arith.constant 0 : index
    %6 = vector.load %arg5[%c0_5, %c0_6, %c0_7] : memref<1x128x32xf32, #tpu.memory_space<vmem>>, vector<1x128x32xf32>
    %7 = vector.shape_cast %6 : vector<1x128x32xf32> to vector<128x32xf32>
    %cst = arith.constant dense<0.000000e+00> : vector<8x128xf32>
    %8 = tpu.matmul %3, %5, %cst {dimension_numbers = #tpu.dot_dimension_numbers<[1], [1], [0], [0], [0, 0, 1, 0], [], []>} : vector<8x32xf32>, vector<128x32xf32>, vector<8x128xf32> -> vector<8x128xf32>
    %9 = tpu.iota {dimensions = array<i32: 1>} : vector<8x128xi32>
    %c8_i32 = arith.constant 8 : i32
    %10 = vector.broadcast %c8_i32 : i32 to vector<8x128xi32>
    %11 = arith.cmpi slt, %9, %10 : vector<8x128xi32>
    %cst_8 = arith.constant -1.000000e+30 : f32
    %12 = vector.broadcast %cst_8 : f32 to vector<8x128xf32>
    %13 = arith.select %11, %8, %12 : vector<8x128xi1>, vector<8x128xf32>
    %c0_9 = arith.constant 0 : index
    %c0_10 = arith.constant 0 : index
    %14 = vector.load %arg8[%c0_9, %c0_10] : memref<8x1xf32, #tpu.memory_space<vmem>>, vector<8x1xf32>
    %cst_11 = arith.constant dense<0xFF800000> : vector<8xf32>
    %15 = vector.multi_reduction <maximumf>, %13, %cst_11 [1] : vector<8x128xf32> to vector<8xf32>
    %16 = vector.shape_cast %15 : vector<8xf32> to vector<8x1xf32>
    %17 = arith.maximumf %14, %16 : vector<8x1xf32>
    %18 = arith.subf %14, %17 : vector<8x1xf32>
    %19 = math.exp %18 : vector<8x1xf32>
    %20 = vector.broadcast %17 : vector<8x1xf32> to vector<8x128xf32>
    %21 = arith.subf %13, %20 : vector<8x128xf32>
    %22 = math.exp %21 : vector<8x128xf32>
    %c0_12 = arith.constant 0 : index
    %c0_13 = arith.constant 0 : index
    %23 = vector.load %arg9[%c0_12, %c0_13] : memref<8x1xf32, #tpu.memory_space<vmem>>, vector<8x1xf32>
    %24 = arith.mulf %19, %23 : vector<8x1xf32>
    %cst_14 = arith.constant dense<0.000000e+00> : vector<8xf32>
    %25 = vector.multi_reduction <add>, %22, %cst_14 [1] : vector<8x128xf32> to vector<8xf32>
    %26 = vector.shape_cast %25 : vector<8xf32> to vector<8x1xf32>
    %27 = arith.addf %24, %26 : vector<8x1xf32>
    %c0_15 = arith.constant 0 : index
    %c0_16 = arith.constant 0 : index
    %28 = vector.load %arg9[%c0_15, %c0_16] : memref<8x1xf32, #tpu.memory_space<vmem>>, vector<8x1xf32>
    tpu.vector_store %arg9[%c0_15, %c0_16], %27 {strides = array<i32>} : memref<8x1xf32, #tpu.memory_space<vmem>>, vector<8x1xf32>,
    %c0_17 = arith.constant 0 : index
    %c0_18 = arith.constant 0 : index
    %29 = vector.load %arg10[%c0_17, %c0_18] : memref<8x32xf32, #tpu.memory_space<vmem>>, vector<8x32xf32>
    %30 = vector.broadcast %19 : vector<8x1xf32> to vector<8x32xf32>
    %31 = arith.mulf %30, %29 : vector<8x32xf32>
    %cst_19 = arith.constant dense<0.000000e+00> : vector<8x32xf32>
    %32 = tpu.matmul %22, %7, %cst_19 {dimension_numbers = #tpu.dot_dimension_numbers<[1], [0], [0], [1], [0, 0, 1, 1], [], []>} : vector<8x128xf32>, vector<128x32xf32>, vector<8x32xf32> -> vector<8x32xf32>
    %33 = arith.addf %31, %32 : vector<8x32xf32>
    %c0_20 = arith.constant 0 : index
    %c0_21 = arith.constant 0 : index
    %34 = vector.load %arg10[%c0_20, %c0_21] : memref<8x32xf32, #tpu.memory_space<vmem>>, vector<8x32xf32>
    tpu.vector_store %arg10[%c0_20, %c0_21], %33 {strides = array<i32>} : memref<8x32xf32, #tpu.memory_space<vmem>>, vector<8x32xf32>,
    %c0_22 = arith.constant 0 : index
    %c0_23 = arith.constant 0 : index
    %35 = vector.load %arg8[%c0_22, %c0_23] : memref<8x1xf32, #tpu.memory_space<vmem>>, vector<8x1xf32>
    tpu.vector_store %arg8[%c0_22, %c0_23], %17 {strides = array<i32>} : memref<8x1xf32, #tpu.memory_space<vmem>>, vector<8x1xf32>,
    %c0_i32_24 = arith.constant 0 : i32
    %36 = arith.cmpi eq, %arg2, %c0_i32_24 : i32
    %37 = arith.extui %36 : i1 to i32
    %c0_i32_25 = arith.constant 0 : i32
    %38 = arith.cmpi ne, %37, %c0_i32_25 : i32
    scf.if %38 {
      %c0_26 = arith.constant 0 : index
      %c0_27 = arith.constant 0 : index
      %39 = vector.load %arg9[%c0_26, %c0_27] : memref<8x1xf32, #tpu.memory_space<vmem>>, vector<8x1xf32>
      %40 = tpu.reciprocal %39 {approx = true} : vector<8x1xf32> -> vector<8x1xf32>
      %c0_28 = arith.constant 0 : index
      %c0_29 = arith.constant 0 : index
      %41 = vector.load %arg10[%c0_28, %c0_29] : memref<8x32xf32, #tpu.memory_space<vmem>>, vector<8x32xf32>
      %42 = vector.broadcast %40 : vector<8x1xf32> to vector<8x32xf32>
      %43 = arith.mulf %41, %42 : vector<8x32xf32>
      %c0_30 = arith.constant 0 : index
      %c0_31 = arith.constant 0 : index
      %c0_32 = arith.constant 0 : index
      %44 = vector.load %arg6[%c0_30, %c0_31, %c0_32] : memref<1x8x32xf32, #tpu.memory_space<vmem>>, vector<1x8x32xf32>
      %45 = vector.shape_cast %44 : vector<1x8x32xf32> to vector<8x32xf32>
      %46 = vector.shape_cast %43 : vector<8x32xf32> to vector<1x8x32xf32>
      tpu.vector_store %arg6[%c0_30, %c0_31, %c0_32], %46 {strides = array<i32>} : memref<1x8x32xf32, #tpu.memory_space<vmem>>, vector<1x8x32xf32>,
    } else {
    }
    return
  }
  func.func @transform_0(%arg0: i32, %arg1: i32, %arg2: i32) -> (i32, i32, i32) {
    %c0_i32 = arith.constant 0 : i32
    %c0_i32_0 = arith.constant 0 : i32
    return %arg0, %arg1, %c0_i32 : i32, i32, i32
  }
  func.func @transform_1(%arg0: i32, %arg1: i32, %arg2: i32) -> (i32, i32, i32) {
    %c0_i32 = arith.constant 0 : i32
    %c0_i32_0 = arith.constant 0 : i32
    return %arg0, %arg2, %c0_i32 : i32, i32, i32
  }
  func.func @transform_2(%arg0: i32, %arg1: i32, %arg2: i32) -> (i32, i32, i32) {
    %c0_i32 = arith.constant 0 : i32
    %c0_i32_0 = arith.constant 0 : i32
    return %arg0, %arg2, %c0_i32 : i32, i32, i32
  }
  func.func @transform_3(%arg0: i32, %arg1: i32, %arg2: i32) -> (i32, i32, i32) {
    %c0_i32 = arith.constant 0 : i32
    %c0_i32_0 = arith.constant 0 : i32
    return %arg0, %arg1, %c0_i32 : i32, i32, i32
  }
}

</mosaic_0001>

<bundles_post_ra>
// kernel: tpu_custom_call.1
= control target key start
LH: loop header
LB: loop body
LE: loop exit
PB: predicated region body
PF: predicated region fallthrough
CT: control target
= control target key end

     0   :  { %8 = vsyncpa [#allocation7], 0  ;;  %s1258_s0 = inlined_call_operand.vmem [shape: f32[2,8,32], index: 0, kind: input, shape index: {}]   ;;  %s1259_s1 = inlined_call_operand.vmem [shape: f32[2,128,32], index: 1, kind: input, shape index: {}]   ;;  %s1260_s2 = inlined_call_operand.vmem [shape: f32[2,128,32], index: 2, kind: input, shape index: {}]   ;;  %s1261_s3 = inlined_call_operand.hbm [shape: f32[2,8,32], index: 3, kind: output, shape index: {}]  }
   0x1   :  { %10 = vsyncpa [#allocation7 + $0x1], 0  ;;  %s1049_s12 = smov 0   ;;  %s1051_s13 = smov 0  }
   0x2   :  { %s1053_s14 = smov 0   ;;  %s1055_s15 = smov 0  }
   0x3   :  { %s1057_s16 = smov 0   ;;  %s1059_s17 = smov 0  }
   0x4 LB: > { %s681_s18 = sadd.s32 4294967295, %s1021_s17   ;;  %s682_s19 = sadd.s32 4294967294, %s1021_s17   ;;  %s1021_s17 = sphi %s1059_s17, %s16_s17   ;;  %s1017_s16 = sphi %s1057_s16, %s1270_s16   ;;  %s1013_s15 = sphi %s1055_s15, %s1269_s15   ;;  %s1009_s14 = sphi %s1053_s14, %s1268_s14   ;;  %s1005_s13 = sphi %s1051_s13, %s1267_s13   ;;  %s1001_s12 = sphi %s1049_s12, %s1266_s12  }
   0x5   : > { %s35_s20 = sadd.s32 1, %s1017_s16  ;;  %s128_s21 = sadd.s32 1, %s1009_s14 }
   0x6   : > { %p37_p0 = scmp.ge.s32.totalorder %s35_s20, 2  ;;  %p138_p1 = scmp.ne.s32.totalorder %s1009_s14, %s1005_s13 }
   0x7   : > { %p139_p2 = scmp.eq.s32.totalorder %s681_s18, 1  ;;  %p144_p3 = scmp.ne.s32.totalorder %s1005_s13, %s1001_s12 }
   0x8   : > { %s1272_s20 = smov (%p37_p0, %s35_s20), 0  ;;  %p145_p5 = scmp.eq.s32.totalorder %s682_s19, 1 }
   0x9   : > { %p1089_p4 = por %p139_p2, %p138_p1  ;;  %s123_s23 = ssub.s32 %s1017_s16, %s1272_s20 }
   0xa   : > { %p685_p6 = scmp.ge.s32.totalorder %s1021_s17, 1  ;;  %p126_p7 = scmp.eq.s32.totalorder %s123_s23, 0 }
   0xb   : > { %p1096_p8 = por %p145_p5, %p144_p3  ;;  %p199_p9 = scmp.lt.s32.totalorder %s1021_s17, 3 }
   0xc   : > { %s1102_s25 = scalar_select %p126_p7, %s1009_s14, %s128_s21  }
   0xd   : > { %p200_p10 = pnand %p685_p6, %p199_p9 }
   0xe   : > { %p243_p11 = scmp.lt.s32.totalorder (!%p200_p10), %s1013_s15, 1  ;;  %vm276_vm0 = vcmask (!%p200_p10), 261120   ;;  %vm278_vm1 = vcmask (!%p200_p10), 7168   ;;  %v1023_v0 = vmov (!%p200_p10), 0.0|0.0   ;;  %v1024_v1 = vmov (!%p200_p10), 0.0   ;;  %s240_s11 = sand.u32 (!%p200_p10), 1, %s1005_s13  }
   0xf   : > { %203 = sbr.rel (%p200_p10) target bundleno = 900 (0x384), region = 32  ;;  %819 = vmatprep.subr.bf16.mxu0 (!%p200_p10), %v1023_v0  ;;  %280 = vst.msk [vmem:[#allocation4] sm:$0xff] (!%p200_p10), %vm278_vm1, %v1024_v1  ;;  %851 = vmatprep.subr.bf16.mxu1 (!%p200_p10), %v1023_v0  ;;  %vm1025_vm2 = vmmov (!%p200_p10), 0   ;;  %vm1126_vm3 = vmpackc.low (!%p200_p10), %vm276_vm0, %vm276_vm0  ;;  %v1026_v30 = vmov (!%p200_p10), -inf   ;;  %v437_v31 = vlaneseq (!%p200_p10)  ;;  %v1027_v36 = vmov (!%p200_p10), 0   ;;  %s686_s18 = sshll.u32 (!%p200_p10), %s240_s11, 3 }
  0x10   : > { %281 = vst.msk [vmem:[#allocation5] sm:$0xff] (!%p200_p10), %vm276_vm0, %v1024_v1  ;;  %781 = vmatprep.mubr.msk.f32.mxu0 (!%p200_p10), %vm1025_vm2, %v1024_v1  ;;  %816 = vmatprep.mubr.msk.f32.mxu1 (!%p200_p10), %vm1025_vm2, %v1024_v1  ;;  %s710_s19 = sshll.u32 (!%p200_p10), %s1013_s15, 7  ;;  %s242_s21 = scalar_lea.vmem (!%p200_p10), [#allocation6], %s686_s18 }
  0x11   : > { %279 = vst.msk [vmem:[#allocation3] sm:$0xff] (!%p200_p10), %vm278_vm1, %v1026_v30  ;;  %v438_v32 = vand.u32 (!%p200_p10), 127, %v437_v31  ;;  %935 = vset.pattern.permute.xlu0 (!%p200_p10), %v1027_v36  ;;  %936 = vset.pattern.permute.xlu1 (!%p200_p10), %v1027_v36  ;;  %s571_s23 = sshll.u32 (!%p200_p10), %s242_s21, 4  ;;  %s557_s29 = scalar_lea.sflag (!%p200_p10), [#allocation7], %s240_s11  ;;  %s1212_s23 = int_to_ptr.vmem [resolvable:$true] %s571_s23 }
  0x12   : > { %s943_s30 = scalar_lea.vmem (!%p200_p10), %s1212_s23, 128 }
  0x13   : > { %vm439_vm4 = vcmp.lt.s32.totalorder (!%p200_p10), %v438_v32, 8  ;;  %p944_p12 = scmp.ne.s32.totalorder (!%p200_p10), %s1212_s23, %s943_s30 }
  0x15   : > { %p945_p13 = pnand (!%p200_p10), %p944_p12, %p1089_p4 }
  0x16   : > { %s1110_s26 = scalar_select %p243_p11, %s1013_s15, 1 }
  0x17   : > { %p946_p0 = pneg %p945_p13  ;;  %s1028_s15 = smov [#allocation6]  }
  0x18   : > { %s687_s27 = sshll.u32 %s1110_s26, 3  ;;  %s713_s28 = sshll.u32 %s1110_s26, 7  ;;  %v441_v49 = vld [vmem:[#allocation3] sm:$0xff] }
  0x19   : > { %s249_s4 = scalar_lea.vmem %s1258_s0, %s687_s27  ;;  %s1122_s7 = scalar_lea.vmem %s1259_s1, %s713_s28 }
  0x1a   : > { %v274_v3 = vld [vmem:[%s249_s4] sm:$0xff]  ;;  %v284_v5 = vld [vmem:[%s1122_s7 + $0x8] sm:$0xff]  ;;  %v285_v8 = vld [vmem:[%s1122_s7 + $0x10] sm:$0xff]  ;;  %s1177_s10 = scalar_lea.vmem %s1260_s2, %s713_s28  ;;  %s1210_s28 = scalar_lea.hbm %s1261_s3, %s710_s19 }
  0x1b   : > { %v283_v4 = vld [vmem:[%s1122_s7] sm:$0xff]  ;;  %v275_v6 = vmul.f32 0.17677669, %v274_v3  ;;  %v286_v9 = vld [vmem:[%s1122_s7 + $0x18] sm:$0xff]  ;;  %v288_v12 = vld [vmem:[%s1122_s7 + $0x28] sm:$0xff]  ;;  %s947_s4 = sshll.u32 %s1028_s15, 4  ;;  %s948_s4 = int_to_ptr.vmem [resolvable:$false] %s947_s4 }
  0x1c   : > { %v820_v7 = vpack.c.bf16 %v284_v5, %v283_v4  ;;  %v824_v10 = vpack.c.bf16 %v286_v9, %v285_v8  ;;  %v287_v11 = vld [vmem:[%s1122_s7 + $0x20] sm:$0xff]  ;;  %v289_v14 = vld [vmem:[%s1122_s7 + $0x30] sm:$0xff]  ;;  %v290_v15 = vld [vmem:[%s1122_s7 + $0x38] sm:$0xff]  ;;  %s949_s5 = scalar_lea.vmem %s948_s4, 256  ;;  %p950_p1 = scmp.lt.s32.totalorder %s1212_s23, %s948_s4 }
  0x1d   : > { %277 = vst.msk [vmem:[#allocation2] sm:$0xff] %vm276_vm0, %v275_v6  ;;  %v828_v13 = vpack.c.bf16 %v288_v12, %v287_v11  ;;  %v832_v16 = vpack.c.bf16 %v290_v15, %v289_v14  ;;  %v291_v17 = vld [vmem:[%s1122_s7 + $0x40] sm:$0xff]  ;;  %v292_v18 = vld [vmem:[%s1122_s7 + $0x48] sm:$0xff]  ;;  %v293_v20 = vld [vmem:[%s1122_s7 + $0x50] sm:$0xff]  ;;  %p951_p2 = scmp.lt.s32.totalorder %s949_s5, %s943_s30 }
  0x1e   : > { %822 = vmatpush3.bf16.xpose.msk.msra.mxu0 %vm1126_vm3, %v820_v7  ;;  %v836_v19 = vpack.c.bf16 %v292_v18, %v291_v17  ;;  %v294_v21 = vld [vmem:[%s1122_s7 + $0x58] sm:$0xff]  ;;  %v295_v23 = vld [vmem:[%s1122_s7 + $0x60] sm:$0xff]  ;;  %v296_v24 = vld [vmem:[%s1122_s7 + $0x68] sm:$0xff] }
  0x1f   : > { %823 = vmatprep.subr.bf16.mxu0 %v1023_v0  ;;  %v840_v22 = vpack.c.bf16 %v294_v21, %v293_v20  ;;  %v844_v25 = vpack.c.bf16 %v296_v24, %v295_v23  ;;  %v297_v26 = vld [vmem:[%s1122_s7 + $0x70] sm:$0xff]  ;;  %v298_v27 = vld [vmem:[%s1122_s7 + $0x78] sm:$0xff]  ;;  %v299_v37 = vld [vmem:[%s1177_s10] sm:$0xff]  ;;  %p952_p3 = por %p951_p2, %p950_p1 }
  0x20   : > { %v848_v28 = vpack.c.bf16 %v298_v27, %v297_v26  ;;  %v300_v38 = vld [vmem:[%s1177_s10 + $0x8] sm:$0xff]  ;;  %v301_v39 = vld [vmem:[%s1177_s10 + $0x10] sm:$0xff]  ;;  %v302_v41 = vld [vmem:[%s1177_s10 + $0x18] sm:$0xff] }
  0x21   : > { %v852_v40 = vpack.c.bf16 %v300_v38, %v299_v37  ;;  %v855_v42 = vpack.c.bf16 %v302_v41, %v301_v39  ;;  %v303_v43 = vld [vmem:[%s1177_s10 + $0x20] sm:$0xff]  ;;  %v304_v44 = vld [vmem:[%s1177_s10 + $0x28] sm:$0xff]  ;;  %v305_v46 = vld [vmem:[%s1177_s10 + $0x30] sm:$0xff]  ;;  %p953_p5 = pnand %p952_p3, %p946_p0 }
  0x22   : > { %v858_v45 = vpack.c.bf16 %v304_v44, %v303_v43  ;;  %v306_v47 = vld [vmem:[%s1177_s10 + $0x38] sm:$0xff]  ;;  %v307_v51 = vld [vmem:[%s1177_s10 + $0x40] sm:$0xff]  ;;  %v308_v52 = vld [vmem:[%s1177_s10 + $0x48] sm:$0xff] }
  0x23   : > { %853 = vmatpush3.bf16.msra.mxu1 %v852_v40  ;;  %v861_v48 = vpack.c.bf16 %v306_v47, %v305_v46  ;;  %v864_v54 = vpack.c.bf16 %v308_v52, %v307_v51  ;;  %v309_v56 = vld [vmem:[%s1177_s10 + $0x50] sm:$0xff]  ;;  %v310_v57 = vld [vmem:[%s1177_s10 + $0x58] sm:$0xff]  ;;  %v311_v59 = vld [vmem:[%s1177_s10 + $0x60] sm:$0xff] }
  0x24   : > { %v282_v29 = vld [vmem:[#allocation2] sm:$0xff]  ;;  %854 = vmatprep.subr.bf16.mxu1 %v1023_v0  ;;  %v867_v58 = vpack.c.bf16 %v310_v57, %v309_v56  ;;  %v312_v60 = vld [vmem:[%s1177_s10 + $0x68] sm:$0xff]  ;;  %v313_v62 = vld [vmem:[%s1177_s10 + $0x70] sm:$0xff] }
  0x25   : > { %v870_v61 = vpack.c.bf16 %v312_v60, %v311_v59  ;;  %v314_v63 = vld [vmem:[%s1177_s10 + $0x78] sm:$0xff]  ;;  %v456_v8 = vld [vmem:[#allocation4] sm:$0xff] }
  0x26   : > { %826 = vmatpush3.bf16.xpose.msk.msra.mxu0 %vm1126_vm3, %v824_v10  ;;  %v873_v1 = vpack.c.bf16 %v314_v63, %v313_v62 }
  0x27   : > { %827 = vmatprep.subr.bf16.mxu0 %v1023_v0  ;;  %856 = vmatpush3.bf16.msra.mxu1 %v855_v42 }
  0x28   : > { %857 = vmatprep.subr.bf16.mxu1 %v1023_v0 }
  0x2b   : > { %859 = vmatpush3.bf16.msra.mxu1 %v858_v45 }
  0x2c   : > { %860 = vmatprep.subr.bf16.mxu1 %v1023_v0 }
  0x2e   : > { %830 = vmatpush3.bf16.xpose.msk.msra.mxu0 %vm1126_vm3, %v828_v13  ;;  %v463_v13 = vld [vmem:[#allocation5] sm:$0xff] }
  0x2f   : > { %831 = vmatprep.subr.bf16.mxu0 %v1023_v0  ;;  %862 = vmatpush3.bf16.msra.mxu1 %v861_v48 }
  0x30   : > { %863 = vmatprep.subr.bf16.mxu1 %v1023_v0 }
  0x33   : > { %865 = vmatpush3.bf16.msra.mxu1 %v864_v54 }
  0x34   : > { %866 = vmatprep.subr.bf16.mxu1 %v1023_v0 }
  0x36   : > { %834 = vmatpush3.bf16.xpose.msk.msra.mxu0 %vm1126_vm3, %v832_v16 }
  0x37   : > { %835 = vmatprep.subr.bf16.mxu0 %v1023_v0  ;;  %868 = vmatpush3.bf16.msra.mxu1 %v867_v58 }
  0x38   : > { %869 = vmatprep.subr.bf16.mxu1 %v1023_v0 }
  0x3b   : > { %871 = vmatpush3.bf16.msra.mxu1 %v870_v61 }
  0x3c   : > { %872 = vmatprep.subr.bf16.mxu1 %v1023_v0 }
  0x3e   : > { %838 = vmatpush3.bf16.xpose.msk.msra.mxu0 %vm1126_vm3, %v836_v19 }
  0x3f   : > { %839 = vmatprep.subr.bf16.mxu0 %v1023_v0  ;;  %874 = vmatpush3.bf16.msra.mxu1 %v873_v1 }
  0x46   : > { %842 = vmatpush3.bf16.xpose.msk.msra.mxu0 %vm1126_vm3, %v840_v22 }
  0x47   : > { %843 = vmatprep.subr.bf16.mxu0 %v1023_v0 }
  0x4e   : > { %846 = vmatpush3.bf16.xpose.msk.msra.mxu0 %vm1126_vm3, %v844_v25 }
  0x4f   : > { %847 = vmatprep.subr.bf16.mxu0 %v1023_v0 }
  0x56   : > { %850 = vmatpush3.bf16.xpose.msk.msra.mxu0 %vm1126_vm3, %v848_v28 }
  0x5d   : > { %782 = vmatmul.mubr.msk.f32.vlgmr.msra.gmra.mrb[0].mxu0 %vm276_vm0, %v282_v29 }
 0x130   : > { %v433_v33 = vpop.f32.mrb[0].mxu0 }
 0x131   : > { %v783_v34 = vpop.f32.mrb[1].mxu0  ;;  %v440_v35 = vsel %vm439_vm4, %v433_v33, -1e+30 }
 0x132   : > { %442 = vmax.xlane.f32.xlu0 %v440_v35 }
 0x1bf   : > { %v443_v50 = vpop.xlane.xlu0 %442 }
 0x1c0   : > { %v444_v53 = vmax.f32 %v441_v49, %v443_v50 }
 0x1c2   : > { %v445_v55 = vsub.f32 %v441_v49, %v444_v53  ;;  %542 = vst.msk [vmem:[#allocation3] sm:$0xff] %vm278_vm1, %v444_v53  ;;  %450 = vperm.xlu0 %935, %v444_v53  }
 0x1c4   : > { %v446_v6 = vmul.f32 1.442695, %v445_v55 }
 0x241   : > { %v451_v2 = vpop.permute.xlu0 %450 }
 0x242   : > { %v453_v3 = vsub.f32 %v440_v35, %v451_v2 }
 0x244   : > { %v454_v4 = vmul.f32 1.442695, %v453_v3 }
 0x246   : > { %937 = vpow2.f32 %v454_v4 }
 0x247   : > { %939 = vpow2.f32 %v446_v6 }
 0x250   : > { %v938_v5 = vpop.eup %937 }
 0x251   : > { %458 = vadd.xlane.f32.xlu1 %v938_v5  ;;  %817 = vmatmul.mubr.f32.vlgmr.msra.gmra.mrb[0].mxu1 %v938_v5  ;;  %v940_v7 = vpop.eup %939 }
 0x252   : > { %v457_v9 = vmul.f32 %v940_v7, %v456_v8 }
 0x262   : > { %466 = vperm.xlu1 %936, %v940_v7  }
 0x2de   : > { %v459_v10 = vpop.xlane.xlu1 %458 }
 0x2df   : > { %v460_v11 = vadd.f32 %v459_v10, %v457_v9 }
 0x2e1   : > { %462 = vst.msk [vmem:[#allocation4] sm:$0xff] %vm278_vm1, %v460_v11 }
 0x2e2   : > { %v467_v14 = vpop.permute.xlu1 %466 }
 0x2e3   : > { %v469_v15 = vmul.f32 %v467_v14, %v463_v13 }
 0x2e8   : > { %v546_v0 = vld [vmem:[#allocation4] sm:$0xff] }
 0x2e9   : > { %941 = vrcp.f32 %v546_v0 }
 0x2f3   : > { %v942_v12 = vpop.eup %941 }
 0x2f4   : > { %551 = vperm.xlu1 %936, %v942_v12  }
 0x324   : > { %v536_v16 = vpop.f32.mrb[0].mxu1 }
 0x325   : > { %v540_v17 = vadd.f32 %v536_v16, %v469_v15  ;;  %v818_v18 = vpop.f32.mrb[1].mxu1 }
 0x327   : > { %541 = vst.msk [vmem:[#allocation5] sm:$0xff] %vm276_vm0, %v540_v17 }
 0x32e   : > { %v548_v19 = vld [vmem:[#allocation5] sm:$0xff] }
 0x373   : > { %v552_v20 = vpop.permute.xlu1 %551 }
 0x374   : > { %v554_v21 = vmul.f32 %v552_v20, %v548_v19 }
 0x376   : > { %555 = vst.msk [vmem:[%s242_s21] sm:$0xff] %vm276_vm0, %v554_v21 }
 0x377   : > { %956 = shalt.err (!%p953_p5)
}
 0x378   : > { %s957_s6 = scalar_lea.hbm %s1210_s28, 128  ;;  %s961_s9 = scalar_lea.hbm %s1261_s3, 256 }
 0x379   : > { %p958_p6 = scmp.ne.s32.totalorder %s1210_s28, %s957_s6  ;;  %p962_p10 = scmp.lt.u32.totalorder %s1210_s28, %s1261_s3 }
 0x37a   : > { %p963_p11 = scmp.lt.u32.totalorder %s961_s9, %s957_s6  ;;  %p965_p13 = scmp.lt.u32.totalorder %s957_s6, %s1210_s28 }
 0x37b   : > { %p959_p7 = pnand %p958_p6, %p1089_p4 }
 0x37c   : > { %p964_p12 = por %p963_p11, %p962_p10 }
 0x37d   : > { %p960_p9 = pneg %p959_p7 }
 0x37e   : > { %p966_p0 = por %p965_p13, %p964_p12 }
 0x380   : > { %p967_p1 = pnand %p966_p0, %p960_p9 }
 0x382   : > { %970 = shalt.err (!%p967_p1)
}
 0x383   : > { %875 = dma.vmem_to_hbm [thread:$0]  (%p1089_p4), %s1212_s23, 128, %s1210_s28, %s557_s29  }
 0x384 PF: > { %p881_p2 = scmp.ge.s32.totalorder %s1021_s17, 2  ;;  %s583_s18 = sand.u32 1, %s1001_s12  }
 0x385   : > { %s584_s19 = scalar_lea.sflag [#allocation7], %s583_s18 }
 0x386   : > { %p878_p3 = pnand %p881_p2, %p1096_p8 }
 0x388   : > { %996 = dma.done.wait (!%p878_p3), %s584_s19, 128  }
 0x389   : > { %998 = vsyncadd (!%p878_p3), %s584_s19, 4294967168  ;;  %s16_s17 = sadd.s32 1, %s1021_s17   ;;  %s1266_s12 = smov %s1005_s13 }
 0x38a   : > { %p13_p5 = scmp.ge.s32.totalorder %s16_s17, 4   ;;  %s1267_s13 = smov %s1009_s14 }
 0x38b   : > { %s1268_s14 = smov %s1102_s25  ;;  %s1269_s15 = smov %s1017_s16 }
 0x38c   : > { %s1270_s16 = smov %s1272_s20  ;;  %15 = sbr.rel (!%p13_p5) target bundleno = 4 (0x4), region = 81 }
 0x393   :  { %589 = vsyncpa [#allocation7], 1 }
 0x394   :  { %591 = vsyncpa [#allocation7 + $0x1], 1 }

</bundles_post_ra>
